<compile_context>
chip_gen: v7x
topology: tpu7x:2x2x1
jax: 0.10.0
libtpu: 0.0.40
codegen_flags: <defaults>
</compile_context>

<pallas_src>
import functools

import jax
import jax.numpy as jnp
from jax.experimental import pallas as pl
from jax.experimental.pallas import tpu as pltpu

TEMPERATURE = 2.0
ALPHA = 0.7


def _round_up(x, m):
    return ((x + m - 1) // m) * m


def _cdiv(a, b):
    return -(-a // b)


def _fused_loss_kernel(*refs, inv_temperature, temperature, min_seq, s_seq,
                       tile_rows, tiles_per_split, compute_ce):
    """One sequence tile of fused KL(teacher || student @ T) + token CE.

    Outputs (per split c, accumulated across the reduction axis k):
      kl_ce_ref[c, 0]  (8, V): partial sums of t_p * (log t_p - log s_p)
      kl_ce_ref[c, 1]  (8, V): partial sums of x_shift[label] over valid tokens (CE only)
      row_ref[c, 0]    (8, 1): partial sums of valid * log-sum-exp(x_shift)   (CE only)
      row_ref[c, 1]    (8, 1): partial sums of the valid-token indicator      (CE only)
    """
    if compute_ce:
        s_ref, t_ref, lbl_ref, kl_ce_ref, row_ref = refs
    else:
        s_ref, t_ref, kl_ce_ref = refs
        lbl_ref = row_ref = None

    c = pl.program_id(0)                      # split (parallel across TensorCores)
    k = pl.program_id(1)                      # sequence tile within the split
    ts = tile_rows
    tile_idx = c * tiles_per_split + k

    @pl.when(k == 0)
    def _init():
        kl_ce_ref[...] = jnp.zeros(kl_ce_ref.shape, kl_ce_ref.dtype)
        if compute_ce:
            row_ref[...] = jnp.zeros(row_ref.shape, row_ref.dtype)

    s_raw = s_ref[...].astype(jnp.float32)    # (B, ts, V)
    B, _, V = s_raw.shape
    seq_pos = tile_idx * ts + jax.lax.broadcasted_iota(jnp.int32, (B, ts, 1), 1)

    def fold(x):  # (B, ts, W) -> (8, W): pure sublane-tile VPU adds, no XLU reduce
        return x.reshape(B * ts // 8, 8, x.shape[-1]).sum(axis=0)

    # ---- shared student chain (used by both KL and CE): one max, one shift, one exp
    max_raw = jnp.max(s_raw, axis=-1, keepdims=True)
    x_shift = s_raw - max_raw                                     # un-scaled shift
    s_sc = x_shift if temperature == 1.0 else x_shift * inv_temperature
    e_s = jnp.exp(s_sc)                                           # exp at temperature

    kl_full = min_seq // ts                   # tiles fully inside the teacher length
    kl_tiles = _cdiv(min_seq, ts)

    def kl_contrib():
        s_logp = s_sc - jnp.log(jnp.sum(e_s, axis=-1, keepdims=True))
        t_sc = t_ref[...].astype(jnp.float32)
        if temperature != 1.0:
            t_sc = t_sc * inv_temperature
        t_shift = t_sc - jnp.max(t_sc, axis=-1, keepdims=True)
        t_exp = jnp.exp(t_shift)
        t_sum = jnp.sum(t_exp, axis=-1, keepdims=True)
        t_logp = t_shift - jnp.log(t_sum)
        t_p = t_exp * (1.0 / t_sum)           # one exact per-row divide + broadcast mul
        return t_p * (t_logp - s_logp)

    if kl_full > 0:
        @pl.when(tile_idx < kl_full)
        def _kl_interior():                   # no mask, no select on interior tiles
            kl_ce_ref[0, 0] += fold(kl_contrib())

    if kl_tiles > kl_full:                    # single boundary tile (min_seq % ts != 0)
        @pl.when(tile_idx == kl_full)
        def _kl_boundary():
            # select (not multiply) so garbage rows from partial blocks cannot leak NaN
            kl_ce_ref[0, 0] += fold(jnp.where(seq_pos < min_seq, kl_contrib(), 0.0))

    if compute_ce:
        # CE LSE reuses the KL exp: exp(x_shift) == exp(x_shift/T)**T for integer T.
        t_exact = float(temperature)
        if t_exact.is_integer() and 1.0 <= t_exact <= 4.0:
            e_x = e_s
            for _ in range(int(t_exact) - 1):
                e_x = e_x * e_s
        else:
            e_x = jnp.exp(x_shift)
        x_lse = jnp.log(jnp.sum(e_x, axis=-1, keepdims=True))    # (B, ts, 1)
        lane = jax.lax.broadcasted_iota(jnp.int32, (B, ts, V), 2)
        lbl = lbl_ref[...]                                        # (B, ts, 1) int32

        def ce_accum(mask_tail):
            valid = lbl != -100
            if mask_tail:                      # only the boundary tile pays this AND
                valid = jnp.logical_and(valid, seq_pos < s_seq)
            hit = jnp.logical_and(lane == lbl, valid)
            kl_ce_ref[0, 1] += fold(jnp.where(hit, x_shift, 0.0))     # x_shift[label]
            row_ref[0, 0] += fold(jnp.where(valid, x_lse, 0.0))       # row-wise LSE
            row_ref[0, 1] += fold(jnp.where(valid, 1.0, 0.0))         # valid count

        ce_full = s_seq // ts
        ce_tiles = _cdiv(s_seq, ts)
        if ce_full > 0:
            @pl.when(tile_idx < ce_full)
            def _ce_interior():
                ce_accum(False)
        if ce_tiles > ce_full:
            @pl.when(tile_idx == ce_full)
            def _ce_boundary():
                ce_accum(True)


def _tpu_specs():
    """(vmem_capacity_bytes, has_two_tensorcores) with conservative fallbacks."""
    vmem_cap = 64 * 1024 * 1024               # conservative (v7x per-TC)
    dual_core = False
    try:
        vmem_cap = int(getattr(pltpu.get_tpu_info(), "vmem_capacity_bytes", vmem_cap))
    except Exception:
        pass
    try:
        kind = (getattr(jax.devices()[0], "device_kind", "") or "").lower()
        dual_core = any(tag in kind for tag in ("v4", "v5p", "v7"))
    except Exception:
        pass
    return vmem_cap, dual_core


def distillation_loss(student_logits, teacher_logits, labels=None,
                      temperature=TEMPERATURE, alpha=ALPHA,
                      vmem_tile_bytes=None):
    B, s_seq, V = student_logits.shape
    tB, t_seq, tV = teacher_logits.shape
    min_seq = min(s_seq, t_seq)
    if tB != B or tV != V:
        raise ValueError(
            f"Shape mismatch after truncation: student={(B, min_seq, V)}, "
            f"teacher={(tB, min_seq, tV)}")

    compute_ce = labels is not None
    total_rows = s_seq if compute_ce else min_seq     # CE needs the full student length

    vmem_cap, dual_core = _tpu_specs()
    vmem_limit = int(min(vmem_cap * 3 // 4, 100 * 1024 * 1024))
    row_f32 = B * V * 4
    if vmem_tile_bytes is None:
        # ~14 live (B, ts, V) f32-equivalent slabs per row: 2 double-buffered logits
        # inputs, the lane-padded label tile, and ~10 compute temporaries.
        ts = (vmem_limit // (14 * row_f32 + B * 256 * 4)) // 8 * 8
    else:
        ts = (vmem_tile_bytes // row_f32) // 8 * 8
    ts = max(8, ts)
    ts = min(ts, _round_up(total_rows, 8))

    total_tiles = _cdiv(total_rows, ts)
    kl_tiles = _cdiv(min_seq, ts)
    n_split = 2 if (dual_core and total_tiles >= 2) else 1
    tiles_per_split = _cdiv(total_tiles, n_split)
    last_tile = total_tiles - 1
    kl_last = kl_tiles - 1

    # ---- no padding / slicing of the logits: clamp tail tiles in the index_maps ----
    operands = [student_logits, teacher_logits]
    in_specs = [
        pl.BlockSpec((B, ts, V),
                     lambda c, k, tps=tiles_per_split, last=last_tile:
                         (0, jnp.minimum(c * tps + k, last), 0)),
        pl.BlockSpec((B, ts, V),
                     lambda c, k, tps=tiles_per_split, last=kl_last:
                         (0, jnp.minimum(c * tps + k, last), 0)),
    ]
    n_slabs = 2 if compute_ce else 1
    out_shapes = [jax.ShapeDtypeStruct((n_split, n_slabs, 8, V), jnp.float32)]
    out_specs = [pl.BlockSpec((1, n_slabs, 8, V), lambda c, k: (c, 0, 0, 0))]
    if compute_ce:
        lbl = labels.astype(jnp.int32)[..., None]         # (B, s_seq, 1)
        operands.append(lbl)
        in_specs.append(
            pl.BlockSpec((B, ts, 1),
                         lambda c, k, tps=tiles_per_split, last=last_tile:
                             (0, jnp.minimum(c * tps + k, last), 0)))
        out_shapes.append(jax.ShapeDtypeStruct((n_split, 2, 8, 1), jnp.float32))
        out_specs.append(pl.BlockSpec((1, 2, 8, 1), lambda c, k: (c, 0, 0, 0)))

    kernel = functools.partial(
        _fused_loss_kernel,
        inv_temperature=1.0 / float(temperature),
        temperature=float(temperature),
        min_seq=min_seq, s_seq=s_seq,
        tile_rows=ts, tiles_per_split=tiles_per_split,
        compute_ce=compute_ce)

    n_elts = B * total_rows * V
    cost = pl.CostEstimate(
        flops=14 * n_elts,
        transcendentals=2 * n_elts,
        bytes_accessed=(B * total_rows * V * student_logits.dtype.itemsize
                        + B * min_seq * V * teacher_logits.dtype.itemsize
                        + (B * s_seq * 4 if compute_ce else 0)
                        + n_split * n_slabs * 8 * V * 4))

    outs = pl.pallas_call(
        kernel,
        out_shape=tuple(out_shapes) if compute_ce else out_shapes[0],
        grid_spec=pltpu.PrefetchScalarGridSpec(
            num_scalar_prefetch=0,
            grid=(n_split, tiles_per_split),
            in_specs=in_specs,
            out_specs=tuple(out_specs) if compute_ce else out_specs[0],
        ),
        compiler_params=pltpu.CompilerParams(
            dimension_semantics=("parallel", "arbitrary"),
            vmem_limit_bytes=vmem_limit),
        cost_estimate=cost,
    )(*operands)

    if compute_ce:
        kl_ce, rows = outs
    else:
        kl_ce = outs

    kl_sum = jnp.sum(kl_ce[:, 0])
    # F.kl_div(..., reduction='batchmean') on the [B, min_seq, V] tensors divides by B.
    distill = kl_sum * jnp.float32(temperature * temperature) / jnp.float32(B)
    if not compute_ce:
        return distill
    pick_sum = jnp.sum(kl_ce[:, 1])
    lse_sum = jnp.sum(rows[:, 0])
    n_valid = jnp.sum(rows[:, 1])
    # TODO(synk): if every label is -100, n_valid == 0 and CE is NaN (matches PyTorch).
    ce = (lse_sum - pick_sum) / n_valid
    return (1.0 - alpha) * ce + alpha * distill


def _ref_loss(student, teacher, labels, temperature, alpha):
    """Pure-JAX reference mirroring the PyTorch module."""
    min_seq = min(student.shape[1], teacher.shape[1])
    s = student[:, :min_seq] / temperature
    t = teacher[:, :min_seq] / temperature
    s_logp = jax.nn.log_softmax(s, axis=-1)
    t_p = jax.nn.softmax(t, axis=-1)
    t_logp = jax.nn.log_softmax(t, axis=-1)
    kl = jnp.sum(t_p * (t_logp - s_logp)) / student.shape[0] * (temperature ** 2)
    if labels is None:
        return kl
    logp = jax.nn.log_softmax(student, axis=-1)
    valid = labels != -100
    safe = jnp.where(valid, labels, 0)
    picked = jnp.take_along_axis(logp, safe[..., None], axis=-1)[..., 0]
    ce = jnp.sum(jnp.where(valid, -picked, 0.0)) / jnp.sum(valid)
    return (1.0 - alpha) * ce + alpha * kl


if __name__ == "__main__":
    key = jax.random.PRNGKey(0)
    k1, k2, k3 = jax.random.split(key, 3)
    B, S_STUDENT, S_TEACHER, V = 2, 16, 24, 128
    student = jax.random.normal(k1, (B, S_STUDENT, V), jnp.float32)
    teacher = jax.random.normal(k2, (B, S_TEACHER, V), jnp.float32)
    labels = jax.random.randint(k3, (B, S_STUDENT), 0, V, jnp.int32)
    labels = labels.at[0, 0].set(-100).at[1, 5].set(-100)   # exercise ignore_index

    loss = distillation_loss(student, teacher, labels)
    jax.block_until_ready(loss)
    loss_no_labels = distillation_loss(student, teacher, None)
    jax.block_until_ready(loss_no_labels)

    expected = _ref_loss(student, teacher, labels, TEMPERATURE, ALPHA)
    expected_nl = _ref_loss(student, teacher, None, TEMPERATURE, ALPHA)
    assert jnp.allclose(loss, expected, rtol=1e-4, atol=1e-5), (loss, expected)
    assert jnp.allclose(loss_no_labels, expected_nl, rtol=1e-4, atol=1e-5), (
        loss_no_labels, expected_nl)

    # Multi-tile / ragged path: student longer than teacher, lengths not tile multiples,
    # small per-tile budget to force several tiles (and the 2-way split on dual-TC chips).
    k4, k5, k6 = jax.random.split(jax.random.PRNGKey(1), 3)
    B2, S2, T2 = 2, 300, 260
    student2 = jax.random.normal(k4, (B2, S2, V), jnp.float32)
    teacher2 = jax.random.normal(k5, (B2, T2, V), jnp.float32)
    labels2 = jax.random.randint(k6, (B2, S2), 0, V, jnp.int32)
    labels2 = labels2.at[0, :7].set(-100)
    loss2 = distillation_loss(student2, teacher2, labels2, vmem_tile_bytes=64 * 1024)
    jax.block_until_ready(loss2)
    expected2 = _ref_loss(student2, teacher2, labels2, TEMPERATURE, ALPHA)
    assert jnp.allclose(loss2, expected2, rtol=1e-4, atol=1e-4), (loss2, expected2)

    # Teacher longer than student, no labels (KL-only, grid covers only min_seq).
    loss3 = distillation_loss(student2[:, :200], teacher2, None,
                              vmem_tile_bytes=64 * 1024)
    jax.block_until_ready(loss3)
    expected3 = _ref_loss(student2[:, :200], teacher2, None, TEMPERATURE, ALPHA)
    assert jnp.allclose(loss3, expected3, rtol=1e-4, atol=1e-4), (loss3, expected3)

    print("KERNEL_OK")
</pallas_src>

<mosaic_0001>
module attributes {stable_mosaic.version = 11 : i64} {
  func.func @_fused_loss_kernel(%arg0: i32, %arg1: i32, %arg2: memref<2x16x128xf32, #tpu.memory_space<vmem>>, %arg3: memref<2x16x128xf32, #tpu.memory_space<vmem>>, %arg4: memref<2x16x1xi32, #tpu.memory_space<vmem>>, %arg5: memref<1x2x8x128xf32, #tpu.memory_space<vmem>>, %arg6: memref<1x2x8x1xf32, #tpu.memory_space<vmem>>) attributes {dimension_semantics = [#tpu.dimension_semantics<parallel>, #tpu.dimension_semantics<arbitrary>], iteration_bounds = array<i64: 1, 1>, scalar_prefetch = 0 : i64, scratch_operands = 0 : i64, tpu.core_type = #tpu.core_type<tc>, window_params = [{transform_indices = @transform_0, window_bounds = array<i64: 2, 16, 128>}, {transform_indices = @transform_1, window_bounds = array<i64: 2, 16, 128>}, {transform_indices = @transform_2, window_bounds = array<i64: 2, 16, 1>}, {transform_indices = @transform_3, window_bounds = array<i64: 1, 2, 8, 128>}, {transform_indices = @transform_4, window_bounds = array<i64: 1, 2, 8, 1>}]} {
    %c1_i32 = arith.constant 1 : i32
    %0 = arith.muli %arg0, %c1_i32 : i32
    %1 = arith.addi %0, %arg1 : i32
    %c0_i32 = arith.constant 0 : i32
    %2 = arith.cmpi eq, %arg1, %c0_i32 : i32
    %3 = arith.extui %2 : i1 to i32
    %c0_i32_0 = arith.constant 0 : i32
    %4 = arith.cmpi ne, %3, %c0_i32_0 : i32
    scf.if %4 {
      %cst_12 = arith.constant 0.000000e+00 : f32
      %25 = vector.broadcast %cst_12 : f32 to vector<1x2x8x128xf32>
      %c0_13 = arith.constant 0 : index
      %c0_14 = arith.constant 0 : index
      %c0_15 = arith.constant 0 : index
      %c0_16 = arith.constant 0 : index
      %26 = vector.load %arg5[%c0_13, %c0_14, %c0_15, %c0_16] : memref<1x2x8x128xf32, #tpu.memory_space<vmem>>, vector<1x2x8x128xf32>
      tpu.vector_store %arg5[%c0_13, %c0_14, %c0_15, %c0_16], %25 {strides = array<i32>} : memref<1x2x8x128xf32, #tpu.memory_space<vmem>>, vector<1x2x8x128xf32>,
      %cst_17 = arith.constant 0.000000e+00 : f32
      %27 = vector.broadcast %cst_17 : f32 to vector<1x2x8x1xf32>
      %c0_18 = arith.constant 0 : index
      %c0_19 = arith.constant 0 : index
      %c0_20 = arith.constant 0 : index
      %c0_21 = arith.constant 0 : index
      %28 = vector.load %arg6[%c0_18, %c0_19, %c0_20, %c0_21] : memref<1x2x8x1xf32, #tpu.memory_space<vmem>>, vector<1x2x8x1xf32>
      tpu.vector_store %arg6[%c0_18, %c0_19, %c0_20, %c0_21], %27 {strides = array<i32>} : memref<1x2x8x1xf32, #tpu.memory_space<vmem>>, vector<1x2x8x1xf32>,
    } else {
    }
    %c0 = arith.constant 0 : index
    %c0_1 = arith.constant 0 : index
    %c0_2 = arith.constant 0 : index
    %5 = vector.load %arg2[%c0, %c0_1, %c0_2] : memref<2x16x128xf32, #tpu.memory_space<vmem>>, vector<2x16x128xf32>
    %cst = arith.constant dense<0xFF800000> : vector<2x16xf32>
    %6 = vector.multi_reduction <maximumf>, %5, %cst [2] : vector<2x16x128xf32> to vector<2x16xf32>
    %7 = vector.shape_cast %6 : vector<2x16xf32> to vector<2x16x1xf32>
    %8 = vector.broadcast %7 : vector<2x16x1xf32> to vector<2x16x128xf32>
    %9 = arith.subf %5, %8 : vector<2x16x128xf32>
    %cst_3 = arith.constant 5.000000e-01 : f32
    %10 = vector.broadcast %cst_3 : f32 to vector<2x16x128xf32>
    %11 = arith.mulf %9, %10 : vector<2x16x128xf32>
    %12 = math.exp %11 : vector<2x16x128xf32>
    %c1_i32_4 = arith.constant 1 : i32
    %13 = arith.cmpi slt, %1, %c1_i32_4 : i32
    %14 = arith.extui %13 : i1 to i32
    %c0_i32_5 = arith.constant 0 : i32
    %15 = arith.cmpi ne, %14, %c0_i32_5 : i32
    scf.if %15 {
      %c0_12 = arith.constant 0 : index
      %c0_13 = arith.constant 0 : index
      %c0_14 = arith.constant 0 : index
      %c0_15 = arith.constant 0 : index
      %25 = vector.load %arg5[%c0_12, %c0_13, %c0_14, %c0_15] : memref<1x2x8x128xf32, #tpu.memory_space<vmem>>, vector<1x1x8x128xf32>
      %26 = vector.shape_cast %25 : vector<1x1x8x128xf32> to vector<8x128xf32>
      %cst_16 = arith.constant dense<0.000000e+00> : vector<2x16xf32>
      %27 = vector.multi_reduction <add>, %12, %cst_16 [2] : vector<2x16x128xf32> to vector<2x16xf32>
      %28 = vector.shape_cast %27 : vector<2x16xf32> to vector<2x16x1xf32>
      %29 = math.log %28 : vector<2x16x1xf32>
      %30 = vector.broadcast %29 : vector<2x16x1xf32> to vector<2x16x128xf32>
      %31 = arith.subf %11, %30 : vector<2x16x128xf32>
      %c0_17 = arith.constant 0 : index
      %c0_18 = arith.constant 0 : index
      %c0_19 = arith.constant 0 : index
      %32 = vector.load %arg3[%c0_17, %c0_18, %c0_19] : memref<2x16x128xf32, #tpu.memory_space<vmem>>, vector<2x16x128xf32>
      %cst_20 = arith.constant 5.000000e-01 : f32
      %33 = vector.broadcast %cst_20 : f32 to vector<2x16x128xf32>
      %34 = arith.mulf %32, %33 : vector<2x16x128xf32>
      %cst_21 = arith.constant dense<0xFF800000> : vector<2x16xf32>
      %35 = vector.multi_reduction <maximumf>, %34, %cst_21 [2] : vector<2x16x128xf32> to vector<2x16xf32>
      %36 = vector.shape_cast %35 : vector<2x16xf32> to vector<2x16x1xf32>
      %37 = vector.broadcast %36 : vector<2x16x1xf32> to vector<2x16x128xf32>
      %38 = arith.subf %34, %37 : vector<2x16x128xf32>
      %39 = math.exp %38 : vector<2x16x128xf32>
      %cst_22 = arith.constant dense<0.000000e+00> : vector<2x16xf32>
      %40 = vector.multi_reduction <add>, %39, %cst_22 [2] : vector<2x16x128xf32> to vector<2x16xf32>
      %41 = vector.shape_cast %40 : vector<2x16xf32> to vector<2x16x1xf32>
      %42 = math.log %41 : vector<2x16x1xf32>
      %43 = vector.broadcast %42 : vector<2x16x1xf32> to vector<2x16x128xf32>
      %44 = arith.subf %38, %43 : vector<2x16x128xf32>
      %cst_23 = arith.constant 1.000000e+00 : f32
      %45 = vector.broadcast %cst_23 : f32 to vector<2x16x1xf32>
      %46 = arith.divf %45, %41 : vector<2x16x1xf32>
      %47 = vector.broadcast %46 : vector<2x16x1xf32> to vector<2x16x128xf32>
      %48 = arith.mulf %39, %47 : vector<2x16x128xf32>
      %49 = arith.subf %44, %31 : vector<2x16x128xf32>
      %50 = arith.mulf %48, %49 : vector<2x16x128xf32>
      %51 = vector.shape_cast %50 : vector<2x16x128xf32> to vector<4x8x128xf32>
      %cst_24 = arith.constant dense<0.000000e+00> : vector<8x128xf32>
      %52 = vector.multi_reduction <add>, %51, %cst_24 [0] : vector<4x8x128xf32> to vector<8x128xf32>
      %53 = arith.addf %26, %52 : vector<8x128xf32>
      %c0_25 = arith.constant 0 : index
      %c0_26 = arith.constant 0 : index
      %c0_27 = arith.constant 0 : index
      %c0_28 = arith.constant 0 : index
      %54 = vector.load %arg5[%c0_25, %c0_26, %c0_27, %c0_28] : memref<1x2x8x128xf32, #tpu.memory_space<vmem>>, vector<1x1x8x128xf32>
      %55 = vector.shape_cast %54 : vector<1x1x8x128xf32> to vector<8x128xf32>
      %56 = vector.shape_cast %53 : vector<8x128xf32> to vector<1x1x8x128xf32>
      tpu.vector_store %arg5[%c0_25, %c0_26, %c0_27, %c0_28], %56 {strides = array<i32>} : memref<1x2x8x128xf32, #tpu.memory_space<vmem>>, vector<1x1x8x128xf32>,
    } else {
    }
    %16 = arith.mulf %12, %12 : vector<2x16x128xf32>
    %cst_6 = arith.constant dense<0.000000e+00> : vector<2x16xf32>
    %17 = vector.multi_reduction <add>, %16, %cst_6 [2] : vector<2x16x128xf32> to vector<2x16xf32>
    %18 = vector.shape_cast %17 : vector<2x16xf32> to vector<2x16x1xf32>
    %19 = math.log %18 : vector<2x16x1xf32>
    %20 = tpu.iota {dimensions = array<i32: 2>} : vector<2x16x128xi32>
    %c0_7 = arith.constant 0 : index
    %c0_8 = arith.constant 0 : index
    %c0_9 = arith.constant 0 : index
    %21 = vector.load %arg4[%c0_7, %c0_8, %c0_9] : memref<2x16x1xi32, #tpu.memory_space<vmem>>, vector<2x16x1xi32>
    %c1_i32_10 = arith.constant 1 : i32
    %22 = arith.cmpi slt, %1, %c1_i32_10 : i32
    %23 = arith.extui %22 : i1 to i32
    %c0_i32_11 = arith.constant 0 : i32
    %24 = arith.cmpi ne, %23, %c0_i32_11 : i32
    scf.if %24 {
      %c-100_i32 = arith.constant -100 : i32
      %25 = vector.broadcast %c-100_i32 : i32 to vector<2x16x1xi32>
      %26 = arith.cmpi ne, %21, %25 : vector<2x16x1xi32>
      %27 = vector.broadcast %21 : vector<2x16x1xi32> to vector<2x16x128xi32>
      %28 = arith.cmpi eq, %20, %27 : vector<2x16x128xi32>
      %29 = vector.broadcast %26 : vector<2x16x1xi1> to vector<2x16x128xi1>
      %30 = arith.andi %28, %29 : vector<2x16x128xi1>
      %c0_12 = arith.constant 0 : index
      %c1 = arith.constant 1 : index
      %c0_13 = arith.constant 0 : index
      %c0_14 = arith.constant 0 : index
      %31 = vector.load %arg5[%c0_12, %c1, %c0_13, %c0_14] : memref<1x2x8x128xf32, #tpu.memory_space<vmem>>, vector<1x1x8x128xf32>
      %32 = vector.shape_cast %31 : vector<1x1x8x128xf32> to vector<8x128xf32>
      %cst_15 = arith.constant 0.000000e+00 : f32
      %33 = vector.broadcast %cst_15 : f32 to vector<2x16x128xf32>
      %34 = arith.select %30, %9, %33 : vector<2x16x128xi1>, vector<2x16x128xf32>
      %35 = vector.shape_cast %34 : vector<2x16x128xf32> to vector<4x8x128xf32>
      %cst_16 = arith.constant dense<0.000000e+00> : vector<8x128xf32>
      %36 = vector.multi_reduction <add>, %35, %cst_16 [0] : vector<4x8x128xf32> to vector<8x128xf32>
      %37 = arith.addf %32, %36 : vector<8x128xf32>
      %c0_17 = arith.constant 0 : index
      %c1_18 = arith.constant 1 : index
      %c0_19 = arith.constant 0 : index
      %c0_20 = arith.constant 0 : index
      %38 = vector.load %arg5[%c0_17, %c1_18, %c0_19, %c0_20] : memref<1x2x8x128xf32, #tpu.memory_space<vmem>>, vector<1x1x8x128xf32>
      %39 = vector.shape_cast %38 : vector<1x1x8x128xf32> to vector<8x128xf32>
      %40 = vector.shape_cast %37 : vector<8x128xf32> to vector<1x1x8x128xf32>
      tpu.vector_store %arg5[%c0_17, %c1_18, %c0_19, %c0_20], %40 {strides = array<i32>} : memref<1x2x8x128xf32, #tpu.memory_space<vmem>>, vector<1x1x8x128xf32>,
      %c0_21 = arith.constant 0 : index
      %c0_22 = arith.constant 0 : index
      %c0_23 = arith.constant 0 : index
      %c0_24 = arith.constant 0 : index
      %41 = vector.load %arg6[%c0_21, %c0_22, %c0_23, %c0_24] : memref<1x2x8x1xf32, #tpu.memory_space<vmem>>, vector<1x1x8x1xf32>
      %42 = vector.shape_cast %41 : vector<1x1x8x1xf32> to vector<8x1xf32>
      %cst_25 = arith.constant 0.000000e+00 : f32
      %43 = vector.broadcast %cst_25 : f32 to vector<2x16x1xf32>
      %44 = arith.select %26, %19, %43 : vector<2x16x1xi1>, vector<2x16x1xf32>
      %45 = vector.shape_cast %44 : vector<2x16x1xf32> to vector<4x8x1xf32>
      %cst_26 = arith.constant dense<0.000000e+00> : vector<8x1xf32>
      %46 = vector.multi_reduction <add>, %45, %cst_26 [0] : vector<4x8x1xf32> to vector<8x1xf32>
      %47 = arith.addf %42, %46 : vector<8x1xf32>
      %c0_27 = arith.constant 0 : index
      %c0_28 = arith.constant 0 : index
      %c0_29 = arith.constant 0 : index
      %c0_30 = arith.constant 0 : index
      %48 = vector.load %arg6[%c0_27, %c0_28, %c0_29, %c0_30] : memref<1x2x8x1xf32, #tpu.memory_space<vmem>>, vector<1x1x8x1xf32>
      %49 = vector.shape_cast %48 : vector<1x1x8x1xf32> to vector<8x1xf32>
      %50 = vector.shape_cast %47 : vector<8x1xf32> to vector<1x1x8x1xf32>
      tpu.vector_store %arg6[%c0_27, %c0_28, %c0_29, %c0_30], %50 {strides = array<i32>} : memref<1x2x8x1xf32, #tpu.memory_space<vmem>>, vector<1x1x8x1xf32>,
      %c0_31 = arith.constant 0 : index
      %c1_32 = arith.constant 1 : index
      %c0_33 = arith.constant 0 : index
      %c0_34 = arith.constant 0 : index
      %51 = vector.load %arg6[%c0_31, %c1_32, %c0_33, %c0_34] : memref<1x2x8x1xf32, #tpu.memory_space<vmem>>, vector<1x1x8x1xf32>
      %52 = vector.shape_cast %51 : vector<1x1x8x1xf32> to vector<8x1xf32>
      %cst_35 = arith.constant 1.000000e+00 : f32
      %cst_36 = arith.constant 0.000000e+00 : f32
      %53 = vector.broadcast %cst_35 : f32 to vector<2x16x1xf32>
      %54 = vector.broadcast %cst_36 : f32 to vector<2x16x1xf32>
      %55 = arith.select %26, %53, %54 : vector<2x16x1xi1>, vector<2x16x1xf32>
      %56 = vector.shape_cast %55 : vector<2x16x1xf32> to vector<4x8x1xf32>
      %cst_37 = arith.constant dense<0.000000e+00> : vector<8x1xf32>
      %57 = vector.multi_reduction <add>, %56, %cst_37 [0] : vector<4x8x1xf32> to vector<8x1xf32>
      %58 = arith.addf %52, %57 : vector<8x1xf32>
      %c0_38 = arith.constant 0 : index
      %c1_39 = arith.constant 1 : index
      %c0_40 = arith.constant 0 : index
      %c0_41 = arith.constant 0 : index
      %59 = vector.load %arg6[%c0_38, %c1_39, %c0_40, %c0_41] : memref<1x2x8x1xf32, #tpu.memory_space<vmem>>, vector<1x1x8x1xf32>
      %60 = vector.shape_cast %59 : vector<1x1x8x1xf32> to vector<8x1xf32>
      %61 = vector.shape_cast %58 : vector<8x1xf32> to vector<1x1x8x1xf32>
      tpu.vector_store %arg6[%c0_38, %c1_39, %c0_40, %c0_41], %61 {strides = array<i32>} : memref<1x2x8x1xf32, #tpu.memory_space<vmem>>, vector<1x1x8x1xf32>,
    } else {
    }
    return
  }
  func.func @transform_0(%arg0: i32, %arg1: i32) -> (i32, i32, i32) {
    %c1_i32 = arith.constant 1 : i32
    %0 = arith.muli %arg0, %c1_i32 : i32
    %1 = arith.addi %0, %arg1 : i32
    %c0_i32 = arith.constant 0 : i32
    %2 = arith.minsi %1, %c0_i32 : i32
    %c0_i32_0 = arith.constant 0 : i32
    %c0_i32_1 = arith.constant 0 : i32
    %c0_i32_2 = arith.constant 0 : i32
    return %c0_i32_0, %2, %c0_i32_1 : i32, i32, i32
  }
  func.func @transform_1(%arg0: i32, %arg1: i32) -> (i32, i32, i32) {
    %c1_i32 = arith.constant 1 : i32
    %0 = arith.muli %arg0, %c1_i32 : i32
    %1 = arith.addi %0, %arg1 : i32
    %c0_i32 = arith.constant 0 : i32
    %2 = arith.minsi %1, %c0_i32 : i32
    %c0_i32_0 = arith.constant 0 : i32
    %c0_i32_1 = arith.constant 0 : i32
    %c0_i32_2 = arith.constant 0 : i32
    return %c0_i32_0, %2, %c0_i32_1 : i32, i32, i32
  }
  func.func @transform_2(%arg0: i32, %arg1: i32) -> (i32, i32, i32) {
    %c1_i32 = arith.constant 1 : i32
    %0 = arith.muli %arg0, %c1_i32 : i32
    %1 = arith.addi %0, %arg1 : i32
    %c0_i32 = arith.constant 0 : i32
    %2 = arith.minsi %1, %c0_i32 : i32
    %c0_i32_0 = arith.constant 0 : i32
    %c0_i32_1 = arith.constant 0 : i32
    %c0_i32_2 = arith.constant 0 : i32
    return %c0_i32_0, %2, %c0_i32_1 : i32, i32, i32
  }
  func.func @transform_3(%arg0: i32, %arg1: i32) -> (i32, i32, i32, i32) {
    %c0_i32 = arith.constant 0 : i32
    %c0_i32_0 = arith.constant 0 : i32
    %c0_i32_1 = arith.constant 0 : i32
    %c0_i32_2 = arith.constant 0 : i32
    return %arg0, %c0_i32, %c0_i32_0, %c0_i32_1 : i32, i32, i32, i32
  }
  func.func @transform_4(%arg0: i32, %arg1: i32) -> (i32, i32, i32, i32) {
    %c0_i32 = arith.constant 0 : i32
    %c0_i32_0 = arith.constant 0 : i32
    %c0_i32_1 = arith.constant 0 : i32
    %c0_i32_2 = arith.constant 0 : i32
    return %arg0, %c0_i32, %c0_i32_0, %c0_i32_1 : i32, i32, i32, i32
  }
}

</mosaic_0001>

<bundles_post_ra>
// kernel: tpu_custom_call.1
= control target key start
LH: loop header
LB: loop body
LE: loop exit
PB: predicated region body
PF: predicated region fallthrough
CT: control target
= control target key end

     0   :  { %10 = vsyncpa [#allocation3], 0  ;;  %s736_s0 = inlined_call_operand.vmem [shape: f32[2,16,128], index: 0, kind: input, shape index: {}]   ;;  %s737_s1 = inlined_call_operand.hbm [shape: f32[2,24,128], index: 1, kind: input, shape index: {}]   ;;  %s738_s2 = inlined_call_operand.vmem [shape: s32[2,16,1], index: 2, kind: input, shape index: {}]   ;;  %s739_s3 = inlined_call_operand.hbm [shape: f32[1,2,8,128], index: 3, kind: output, shape index: {0}]   ;;  %s740_s4 = inlined_call_operand.vmem [shape: f32[1,2,8,1], index: 4, kind: output, shape index: {1}]  }
   0x1   :  { %11 = vsyncpa [#allocation4], 0 }
   0x2   :  { %s48_s15 = sld [smem:[#allocation0]]   ;;  %s519_s16 = smov [#allocation2]  }
   0x3   :  { %s56_s17 = sshll.u32 %s519_s16, 4  ;;  %s520_s18 = smov 384   ;;  %s57_s17 = int_to_ptr.vmem [resolvable:$true] %s56_s17 }
   0x4   :  { %63 = sst [smem:[#allocation7]] %s520_s18  ;;  %s521_s19 = smov 256  }
   0x5   :  { %65 = sst [smem:[#allocation7 + $0x1]] %s521_s19  ;;  %s522_s20 = smov 2  }
   0x6   :  { %67 = sst [smem:[#allocation7 + $0x2]] %s522_s20  ;;  %s523_s22 = smov 128  }
   0x7   :  { %69 = sst [smem:[#allocation7 + $0x3]] %s523_s22  ;;  %s524_s24 = smov 8  }
   0x8   :  { %s426_s21 = sshll.u32 %s48_s15, 26  ;;  %71 = sst [smem:[#allocation7 + $0x4]] %s523_s22 }
   0x9   :  { %s427_s23 = sadd.s32 134217728, %s426_s21  ;;  %73 = sst [smem:[#allocation7 + $0x5]] %s524_s24 }
   0xa   :  { %s525_s25 = smov [#allocation3]   ;;  %s526_s26 = smov [#allocation6]  }
   0xb   :  { %75 = dma.general %s737_s1, 512, %s57_s17, %s525_s25, %s526_s26, [#allocation7], %s427_s23, 0  }
   0xc   :  { %515 = dma.done.wait [#allocation3], 512  }
   0xd   :  { %516 = vsyncadd [#allocation3], 4294966784  ;;  %v153_v0 = vld [vmem:[%s736_s0 + $0x10] sm:$0xff]  ;;  %v151_v1 = vld [vmem:[%s736_s0] sm:$0xff]  ;;  %vm148_vm0 = vcmask 7168   ;;  %v527_v12 = vmov 0  }
   0xe   :  { %159 = vmax.xlane.f32.xlu1 %v153_v0  ;;  %155 = vmax.xlane.f32.xlu0 %v151_v1  ;;  %v154_v2 = vld [vmem:[%s736_s0 + $0x18] sm:$0xff]  ;;  %v152_v3 = vld [vmem:[%s736_s0 + $0x8] sm:$0xff]  ;;  %v204_v4 = vld [vmem:[#allocation2] sm:$0xff]  ;;  %v528_v13 = vmov 0.0  }
   0xf   :  { %v205_v5 = vld [vmem:[#allocation2 + $0x8] sm:$0xff]  ;;  %v208_v6 = vmul.f32 0.5, %v204_v4  ;;  %v206_v8 = vld [vmem:[#allocation2 + $0x10] sm:$0xff]  ;;  %v207_v9 = vld [vmem:[#allocation2 + $0x18] sm:$0xff]  ;;  %444 = vset.pattern.permute.xlu1 %v527_v12  ;;  %149 = vst.msk [vmem:[%s740_s4] sm:$0xff] %vm148_vm0, %v528_v13  ;;  %443 = vset.pattern.permute.xlu0 %v527_v12 }
  0x10   :  { %v209_v7 = vmul.f32 0.5, %v205_v5  ;;  %v210_v10 = vmul.f32 0.5, %v206_v8  ;;  %v211_v11 = vmul.f32 0.5, %v207_v9  ;;  %150 = vst.msk [vmem:[%s740_s4 + $0x8] sm:$0xff] %vm148_vm0, %v528_v13  ;;  %v585_v14 = vld [vmem:[%s738_s2] sm:$0xff]  ;;  %v590_v15 = vld [vmem:[%s738_s2 + $0x8] sm:$0xff] }
  0x11   :  { %vm307_vm1 = vcmp.ne.s32.totalorder %v590_v15, 4294967196  ;;  %vm306_vm2 = vcmp.ne.s32.totalorder %v585_v14, 4294967196  ;;  %v601_v18 = vld [vmem:[%s738_s2 + $0x10] sm:$0xff]  ;;  %v612_v25 = vld [vmem:[%s738_s2 + $0x18] sm:$0xff]  ;;  %s529_s2 = smov [#allocation5]  }
  0x12   :  { %161 = vmax.xlane.f32.xlu1 %v154_v2  ;;  %157 = vmax.xlane.f32.xlu0 %v152_v3  ;;  %v379_v16 = vsel %vm307_vm1, 1.0, %v528_v13  ;;  %v378_v17 = vsel %vm306_vm2, 1.0, %v528_v13  ;;  %vm308_vm3 = vcmp.ne.s32.totalorder %v601_v18, 4294967196  ;;  %vm309_vm4 = vcmp.ne.s32.totalorder %v612_v25, 4294967196  ;;  %s396_s25 = sshll.u32 %s529_s2, 4  ;;  %s397_s25 = int_to_ptr.vmem [resolvable:$true] %s396_s25 }
  0x13   :  { %v383_v19 = vsel %vm148_vm0, %v379_v16, 0.0  ;;  %v382_v20 = vsel %vm148_vm0, %v378_v17, 0.0  ;;  %v380_v21 = vsel %vm308_vm3, 1.0, %v528_v13  ;;  %v381_v26 = vsel %vm309_vm4, 1.0, %v528_v13  ;;  %s493_s26 = scalar_lea.vmem %s397_s25, 256  ;;  %p498_p1 = scmp.lt.s32.totalorder %s397_s25, %s397_s25 }
  0x14   :  { %v384_v22 = vadd.f32 %v383_v19, %v382_v20  ;;  %v385_v23 = vsel %vm148_vm0, %v380_v21, 0.0  ;;  %v387_v27 = vsel %vm148_vm0, %v381_v26, 0.0  ;;  %v328_v8 = vsel %vm308_vm3, 1, %v527_v12  ;;  %p494_p0 = scmp.ne.s32.totalorder %s397_s25, %s493_s26  ;;  %p499_p2 = scmp.lt.s32.totalorder %s493_s26, %s493_s26 }
  0x16   :  { %212 = vmax.xlane.f32.xlu1 %v208_v6  ;;  %214 = vmax.xlane.f32.xlu0 %v209_v7  ;;  %v386_v24 = vadd.f32 %v385_v23, %v384_v22  ;;  %p500_p3 = por %p499_p2, %p498_p1 }
  0x17   :  { %v428_v29 = vld [vmem:[%s740_s4 + $0x8] sm:$0xff] }
  0x18   :  { %v388_v28 = vadd.f32 %v387_v27, %v386_v24  ;;  %p501_p4 = pnand %p500_p3, %p494_p0 }
  0x1a   :  { %216 = vmax.xlane.f32.xlu0 %v210_v10  ;;  %218 = vmax.xlane.f32.xlu1 %v211_v11  ;;  %v389_v30 = vadd.f32 %v428_v29, %v388_v28 }
  0x1c   :  { %429 = vst.msk [vmem:[%s740_s4 + $0x8] sm:$0xff] %vm148_vm0, %v389_v30 }
  0x9b   :  { %v160_v31 = vpop.xlane.xlu1 %159  ;;  %v156_v32 = vpop.xlane.xlu0 %155 }
  0x9c   :  { %v625_v33 = vsub.f32 %v151_v1, %v156_v32  ;;  %v630_v35 = vsub.f32 %v153_v0, %v160_v31 }
  0x9e   :  { %v628_v34 = vmul.f32 0.5, %v625_v33  ;;  %v639_v41 = vmul.f32 0.5, %v630_v35 }
  0x9f   :  { %v162_v36 = vpop.xlane.xlu1 %161  ;;  %v158_v37 = vpop.xlane.xlu0 %157 }
  0xa0   :  { %v171_v38 = vmul.f32 1.442695, %v628_v34  ;;  %v633_v39 = vsub.f32 %v152_v3, %v158_v37  ;;  %v641_v44 = vsub.f32 %v154_v2, %v162_v36  ;;  %v175_v52 = vmul.f32 1.442695, %v639_v41 }
  0xa2   :  { %v636_v40 = vmul.f32 0.5, %v633_v39  ;;  %445 = vpow2.f32 %v171_v38  ;;  %v652_v53 = vmul.f32 0.5, %v641_v44 }
  0xa3   :  { %v213_v42 = vpop.xlane.xlu1 %212  ;;  %v215_v43 = vpop.xlane.xlu0 %214 }
  0xa4   :  { %v173_v45 = vmul.f32 1.442695, %v636_v40  ;;  %v644_v46 = vsub.f32 %v208_v6, %v213_v42  ;;  %v646_v47 = vsub.f32 %v209_v7, %v215_v43  ;;  %v177_v57 = vmul.f32 1.442695, %v652_v53 }
  0xa5   :  { %v326_v6 = vsel %vm306_vm2, 1, %v527_v12  ;;  %v327_v7 = vsel %vm307_vm1, 1, %v527_v12 }
  0xa6   :  { %v224_v48 = vmul.f32 1.442695, %v644_v46  ;;  %v226_v49 = vmul.f32 1.442695, %v646_v47  ;;  %447 = vpow2.f32 %v173_v45 }
  0xa7   :  { %v217_v50 = vpop.xlane.xlu0 %216  ;;  %v219_v51 = vpop.xlane.xlu1 %218 }
  0xa8   :  { %449 = vpow2.f32 %v224_v48  ;;  %v654_v54 = vsub.f32 %v210_v10, %v217_v50  ;;  %v656_v55 = vsub.f32 %v211_v11, %v219_v51  ;;  %v329_v10 = vsel %vm309_vm4, 1, %v527_v12 }
  0xa9   :  { %451 = vpow2.f32 %v226_v49 }
  0xaa   :  { %v228_v56 = vmul.f32 1.442695, %v654_v54  ;;  %453 = vpow2.f32 %v175_v52  ;;  %v230_v59 = vmul.f32 1.442695, %v656_v55 }
  0xac   :  { %v446_v58 = vpop.eup %445  ;;  %455 = vpow2.f32 %v228_v56 }
  0xad   :  { %184 = vadd.xlane.f32.xlu0 %v446_v58  ;;  %457 = vpow2.f32 %v177_v57  ;;  %v277_v3 = vmul.f32 %v446_v58, %v446_v58 }
  0xae   :  { %459 = vpow2.f32 %v230_v59 }
  0xb0   :  { %v448_v60 = vpop.eup %447 }
  0xb1   :  { %186 = vadd.xlane.f32.xlu1 %v448_v60  ;;  %v278_v4 = vmul.f32 %v448_v60, %v448_v60 }
  0xb2   :  { %v661_v61 = vpop.eup %449 }
  0xb3   :  { %v663_v62 = vpop.eup %451  ;;  %232 = vadd.xlane.f32.xlu0 %v661_v61 }
  0xb4   :  { %v454_v63 = vpop.eup %453 }
  0xb5   :  { %234 = vadd.xlane.f32.xlu1 %v663_v62  ;;  %v279_v5 = vmul.f32 %v454_v63, %v454_v63 }
  0xb6   :  { %v667_v0 = vpop.eup %455 }
  0xb7   :  { %188 = vadd.xlane.f32.xlu0 %v454_v63  ;;  %v458_v1 = vpop.eup %457 }
  0xb8   :  { %v670_v2 = vpop.eup %459  ;;  %v280_v9 = vmul.f32 %v458_v1, %v458_v1 }
  0xb9   :  { %236 = vadd.xlane.f32.xlu1 %v667_v0 }
  0xbb   :  { %190 = vadd.xlane.f32.xlu0 %v458_v1 }
  0xbd   :  { %238 = vadd.xlane.f32.xlu1 %v670_v2 }
  0xbf   :  { %281 = vadd.xlane.f32.xlu0 %v277_v3 }
  0xc1   :  { %283 = vadd.xlane.f32.xlu1 %v278_v4 }
  0xc3   :  { %285 = vadd.xlane.f32.xlu0 %v279_v5 }
  0xd2   :  { %314 = vperm.xlu1 %444, %v590_v15  }
  0xd6   :  { %331 = vperm.xlu1 %444, %v326_v6  }
  0xd9   :  { %311 = vperm.xlu0 %443, %v585_v14  }
  0xda   :  { %334 = vperm.xlu1 %444, %v327_v7  }
  0xde   :  { %317 = vperm.xlu1 %444, %v601_v18  }
  0xe2   :  { %337 = vperm.xlu1 %444, %v328_v8  }
  0xe6   :  { %320 = vperm.xlu1 %444, %v612_v25  }
 0x10a   :  { %287 = vadd.xlane.f32.xlu1 %v280_v9 }
 0x11b   :  { %340 = vperm.xlu1 %444, %v329_v10  }
 0x13a   :  { %v185_v11 = vpop.xlane.xlu0 %184 }
 0x13b   :  { %461 = vlog2.f32 %v185_v11 }
 0x13e   :  { %v187_v13 = vpop.xlane.xlu1 %186 }
 0x13f   :  { %463 = vlog2.f32 %v187_v13 }
 0x140   :  { %v233_v16 = vpop.xlane.xlu0 %232 }
 0x141   :  { %465 = vlog2.f32 %v233_v16 }
 0x142   :  { %v235_v17 = vpop.xlane.xlu1 %234 }
 0x143   :  { %467 = vlog2.f32 %v235_v17 }
 0x144   :  { %v189_v19 = vpop.xlane.xlu0 %188  ;;  %469 = vrcp.f32 %v233_v16 }
 0x145   :  { %471 = vlog2.f32 %v189_v19  ;;  %v462_v22 = vpop.eup %461 }
 0x146   :  { %473 = vrcp.f32 %v235_v17  ;;  %v237_v20 = vpop.xlane.xlu1 %236  ;;  %v193_v29 = vmul.f32 0.6931472, %v462_v22 }
 0x147   :  { %475 = vlog2.f32 %v237_v20 }
 0x148   :  { %v191_v21 = vpop.xlane.xlu0 %190  ;;  %477 = vrcp.f32 %v237_v20  ;;  %v200_v48 = vsub.f32 %v628_v34, %v193_v29 }
 0x149   :  { %v464_v23 = vpop.eup %463  ;;  %479 = vlog2.f32 %v191_v21 }
 0x14a   :  { %v239_v24 = vpop.xlane.xlu1 %238  ;;  %v195_v27 = vmul.f32 0.6931472, %v464_v23 }
 0x14b   :  { %v466_v12 = vpop.eup %465  ;;  %481 = vlog2.f32 %v239_v24 }
 0x14c   :  { %v241_v26 = vmul.f32 0.6931472, %v466_v12  ;;  %483 = vrcp.f32 %v239_v24  ;;  %v201_v38 = vsub.f32 %v636_v40, %v195_v27  ;;  %v282_v16 = vpop.xlane.xlu0 %281 }
 0x14d   :  { %v468_v28 = vpop.eup %467 }
 0x14e   :  { %v470_v30 = vpop.eup %469  ;;  %v243_v31 = vmul.f32 0.6931472, %v468_v28  ;;  %v248_v36 = vsub.f32 %v644_v46, %v241_v26 }
 0x14f   :  { %v472_v32 = vpop.eup %471  ;;  %v260_v40 = vmul.f32 %v470_v30, %v661_v61  ;;  %v284_v61 = vpop.xlane.xlu1 %283 }
 0x150   :  { %v474_v37 = vpop.eup %473  ;;  %v249_v42 = vsub.f32 %v646_v47, %v243_v31  ;;  %v197_v43 = vmul.f32 0.6931472, %v472_v32  ;;  %v264_v56 = vsub.f32 %v248_v36, %v200_v48  ;;  %485 = vlog2.f32 %v284_v61  ;;  %v286_v19 = vpop.xlane.xlu0 %285 }
 0x151   :  { %v476_v45 = vpop.eup %475  ;;  %v261_v57 = vmul.f32 %v474_v37, %v663_v62  ;;  %487 = vlog2.f32 %v282_v16 }
 0x152   :  { %v478_v49 = vpop.eup %477  ;;  %v265_v50 = vsub.f32 %v249_v42, %v201_v38  ;;  %v245_v51 = vmul.f32 0.6931472, %v476_v45  ;;  %v202_v58 = vsub.f32 %v639_v41, %v197_v43  ;;  %v268_v4 = vmul.f32 %v264_v56, %v260_v40 }
 0x153   :  { %v480_v52 = vpop.eup %479  ;;  %v262_v63 = vmul.f32 %v478_v49, %v667_v0  ;;  %v315_v11 = vpop.permute.xlu1 %314  ;;  %489 = vlog2.f32 %v286_v19 }
 0x154   :  { %v250_v46 = vsub.f32 %v654_v54, %v245_v51  ;;  %v199_v59 = vmul.f32 0.6931472, %v480_v52  ;;  %v269_v47 = vmul.f32 %v265_v50, %v261_v57 }
 0x155   :  { %v482_v60 = vpop.eup %481 }
 0x156   :  { %v266_v1 = vsub.f32 %v250_v46, %v202_v58  ;;  %v247_v34 = vmul.f32 0.6931472, %v482_v60  ;;  %v484_v3 = vpop.eup %483  ;;  %v203_v6 = vsub.f32 %v652_v53, %v199_v59  ;;  %v272_v7 = vadd.f32 %v269_v47, %v268_v4 }
 0x157   :  { %v263_v41 = vmul.f32 %v484_v3, %v670_v2  ;;  %v332_v0 = vpop.permute.xlu1 %331  ;;  %v297_v53 = vlaneseq }
 0x158   :  { %v270_v5 = vmul.f32 %v266_v1, %v262_v63  ;;  %v251_v62 = vsub.f32 %v656_v55, %v247_v34  ;;  %v312_v21 = vpop.permute.xlu0 %311  ;;  %vm342_vm9 = vcmp.eq.s32.totalorder %v332_v0, 1 }
 0x159   :  { %v298_v55 = vand.u32 127, %v297_v53 }
 0x15a   :  { %v267_v54 = vsub.f32 %v251_v62, %v203_v6  ;;  %v273_v8 = vadd.f32 %v272_v7, %v270_v5  ;;  %v486_v22 = vpop.eup %485 }
 0x15b   :  { %v335_v13 = vpop.permute.xlu1 %334  ;;  %vm322_vm6 = vcmp.eq.s32.totalorder %v298_v55, %v312_v21  ;;  %vm323_vm7 = vcmp.eq.s32.totalorder %v298_v55, %v315_v11  ;;  %v488_v23 = vpop.eup %487  ;;  %v292_v12 = vmul.f32 0.6931472, %v486_v22 }
 0x15c   :  { %v271_v9 = vmul.f32 %v267_v54, %v263_v41  ;;  %vm343_vm5 = vcmp.eq.s32.totalorder %v335_v13, 1  ;;  %vm346_vm11 = vmand %vm322_vm6, %vm342_vm9  ;;  %v290_v28 = vmul.f32 0.6931472, %v488_v23 }
 0x15d   :  { %vm347_vm10 = vmand %vm323_vm7, %vm343_vm5  ;;  %v490_v26 = vpop.eup %489  ;;  %v352_v29 = vsel %vm346_vm11, %v625_v33, 0.0  ;;  %v363_v31 = vsel %vm307_vm1, %v292_v12, 0.0 }
 0x15e   :  { %v274_v10 = vadd.f32 %v273_v8, %v271_v9  ;;  %v353_v27 = vsel %vm347_vm10, %v633_v39, 0.0  ;;  %v294_v32 = vmul.f32 0.6931472, %v490_v26  ;;  %v362_v38 = vsel %vm306_vm2, %v290_v28, 0.0 }
 0x15f   :  { %v318_v17 = vpop.permute.xlu1 %317  ;;  %v356_v36 = vadd.f32 %v353_v27, %v352_v29  ;;  %v368_v39 = vsel %vm148_vm0, %v363_v31, 0.0  ;;  %v367_v43 = vsel %vm148_vm0, %v362_v38, 0.0 }
 0x160   :  { %276 = vst [vmem:[#allocation5] sm:$0xff] %v274_v10  ;;  %vm324_vm12 = vcmp.eq.s32.totalorder %v298_v55, %v318_v17  ;;  %v364_v15 = vsel %vm308_vm3, %v294_v32, 0.0  ;;  %v369_v45 = vadd.f32 %v368_v39, %v367_v43 }
 0x161   :  { %v370_v14 = vsel %vm148_vm0, %v364_v15, 0.0 }
 0x163   :  { %v338_v20 = vpop.permute.xlu1 %337 }
 0x164   :  { %vm344_vm8 = vcmp.eq.s32.totalorder %v338_v20, 1 }
 0x165   :  { %vm348_vm13 = vmand %vm324_vm12, %vm344_vm8 }
 0x166   :  { %v354_v30 = vsel %vm348_vm13, %v630_v35, 0.0 }
 0x167   :  { %v321_v2 = vpop.permute.xlu1 %320  ;;  %v357_v42 = vadd.f32 %v356_v36, %v354_v30 }
 0x168   :  { %vm325_vm14 = vcmp.eq.s32.totalorder %v298_v55, %v321_v2 }
 0x197   :  { %v288_v24 = vpop.xlane.xlu1 %287 }
 0x198   :  { %491 = vlog2.f32 %v288_v24 }
 0x19b   :  { %v341_v37 = vpop.permute.xlu1 %340 }
 0x19c   :  { %vm345_vm15 = vcmp.eq.s32.totalorder %v341_v37, 1 }
 0x19d   :  { %vm349_vm5 = vmand %vm325_vm14, %vm345_vm15 }
 0x19e   :  { %v355_v33 = vsel %vm349_vm5, %v641_v44, 0.0 }
 0x19f   :  { %v358_v35 = vadd.f32 %v357_v42, %v355_v33 }
 0x1a1   :  { %360 = vst [vmem:[#allocation5 + $0x8] sm:$0xff] %v358_v35 }
 0x1a2   :  { %v492_v48 = vpop.eup %491 }
 0x1a3   :  { %v296_v49 = vmul.f32 0.6931472, %v492_v48 }
 0x1a4   :  { %504 = shalt.err (!%p501_p4)
}
 0x1a5   :  { %s505_s29 = scalar_lea.hbm %s739_s3, 256 }
 0x1a6   :  { %p506_p5 = scmp.ne.s32.totalorder %s739_s3, %s505_s29  ;;  %p509_p6 = scmp.lt.u32.totalorder %s505_s29, %s739_s3 }
 0x1a8   :  { %p511_p7 = pnand %p509_p6, %p506_p5 }
 0x1aa   :  { %514 = shalt.err (!%p511_p7)
}
 0x1ab   :  { %s530_s8 = smov 128   ;;  %s531_s9 = smov 8   ;;  %v371_v18 = vadd.f32 %v370_v14, %v369_v45  ;;  %v365_v44 = vsel %vm309_vm4, %v296_v49, 0.0  ;;  %v361_v50 = vld [vmem:[%s740_s4] sm:$0xff] }
 0x1ac   :  { %402 = dma.vmem_to_hbm [thread:$0]  %s397_s25, 256, %s739_s3, [#allocation4], %s530_s8, %s530_s8, %s531_s9   ;;  %v372_v51 = vsel %vm148_vm0, %v365_v44, 0.0 }
 0x1ad   :  { %v373_v52 = vadd.f32 %v372_v51, %v371_v18 }
 0x1af   :  { %v374_v56 = vadd.f32 %v373_v52, %v361_v50 }
 0x1b1   :  { %375 = vst.msk [vmem:[%s740_s4] sm:$0xff] %vm148_vm0, %v374_v56 }
 0x1b2   :  { %517 = dma.done.wait [#allocation4], 256  }
 0x1b3   :  { %518 = vsyncadd [#allocation4], 4294967040 }
 0x1b4   :  { %410 = vsyncpa [#allocation3], 1 }
 0x1b5   :  { %411 = vsyncpa [#allocation4], 1 }

</bundles_post_ra>
